<compile_context>
chip_gen: v5e
topology: v5e:2x2
jax: 0.10.0
libtpu: 0.0.40
codegen_flags: <defaults>
</compile_context>

<pallas_src>
import jax
import jax.numpy as jnp
from jax.experimental import pallas as pl
from jax.experimental.pallas import tpu as pltpu

OUTPUT_SIZE = 3
OUT_PAD = 128  # lane-dense padded output width


def _round_up(x, m):
    return ((x + m - 1) // m) * m


def mlp_kernel(x_ref,
               w1_ref, t1_ref,
               w2_ref, t2_ref,
               w3_ref, t3_ref,
               w4_ref, b4_ref,
               o_ref):
    # f32 tile read from HBM, cast to bf16 in-register for the MXU.
    x = x_ref[...].astype(jnp.bfloat16)

    # Linear(input, hidden) with BN scale folded into weights + folded shift + ReLU
    # (Dropout = identity in eval).
    h = jnp.dot(x, w1_ref[...], preferred_element_type=jnp.float32) + t1_ref[...]
    h = jnp.maximum(h, 0.0)

    # Linear(hidden, 128) + folded BN shift + LeakyReLU(0.01)
    h = jnp.dot(h.astype(jnp.bfloat16), w2_ref[...],
                preferred_element_type=jnp.float32) + t2_ref[...]
    h = jnp.where(h > 0.0, h, 0.01 * h)

    # Linear(128, 64) (padded to 128 lanes) + folded BN shift + ReLU
    h = jnp.dot(h.astype(jnp.bfloat16), w3_ref[...],
                preferred_element_type=jnp.float32) + t3_ref[...]
    h = jnp.maximum(h, 0.0)

    # Final Linear(64, 3) -> lane-dense 128-wide slab, stored as bf16.
    o = jnp.dot(h.astype(jnp.bfloat16), w4_ref[...],
                preferred_element_type=jnp.float32) + b4_ref[...]
    o_ref[...] = o.astype(jnp.bfloat16)


def mlp_forward(x, params, *, tb=1024):
    """x: [B, input_size] float32. params: flat tuple from init_params(). Jit me."""
    B, d_in = x.shape
    (w1, t1, w2, t2, w3, t3, w4, b4) = params

    # Batch tile: as large as sensible, but always an 8-multiple and always >= 2
    # grid steps so both v7x TensorCores get work under "parallel" semantics.
    TB = min(tb, _round_up(B, 8))
    if _round_up(B, TB) // TB < 2 and TB >= 16:
        TB = _round_up(TB // 2, 8)
    B_pad = max(_round_up(B, TB), 2 * TB)

    if B_pad != B:
        x = jnp.pad(x, ((0, B_pad - B), (0, 0)))

    grid = (B_pad // TB,)

    def const_spec(p):
        # Whole array, same block every grid step -> stays VMEM-resident.
        return pl.BlockSpec(p.shape, lambda i: (0, 0))

    in_specs = [pl.BlockSpec((TB, d_in), lambda i: (i, 0))] + [const_spec(p) for p in params]
    out_specs = pl.BlockSpec((TB, OUT_PAD), lambda i: (i, 0))

    h1, h2, h3 = w1.shape[1], w2.shape[1], w3.shape[1]
    param_bytes = sum(int(p.size) * p.dtype.itemsize for p in params)
    flops = 2 * B_pad * (d_in * h1 + h1 * h2 + h2 * h3 + h3 * OUT_PAD)
    bytes_accessed = int(B_pad * d_in * 4 + param_bytes + B_pad * OUT_PAD * 2)

    # VMEM actually needed: double-buffered x (f32) + out (bf16) tiles, resident params
    # (counted twice for safety), plus slack for compiler internal scratch.
    vmem_need = 2 * (TB * d_in * 4 + TB * OUT_PAD * 2) + 2 * param_bytes + (4 << 20)
    vmem_limit = max(16 << 20, min(vmem_need, 96 << 20))

    out = pl.pallas_call(
        mlp_kernel,
        out_shape=jax.ShapeDtypeStruct((B_pad, OUT_PAD), jnp.bfloat16),
        grid=grid,
        in_specs=in_specs,
        out_specs=out_specs,
        compiler_params=pltpu.CompilerParams(
            dimension_semantics=("parallel",),
            vmem_limit_bytes=int(vmem_limit),
        ),
        cost_estimate=pl.CostEstimate(
            flops=flops, bytes_accessed=bytes_accessed, transcendentals=0),
    )(x, *params)

    # Under jit this slice/cast fuses into a tiny follow-on op (reads only B*3 elements).
    return out[:B, :OUTPUT_SIZE].astype(jnp.float32)


def init_params(key, input_size, hidden_size):
    """Deterministic synthetic parameters with BN + linear bias folded in.

    Layout: (w1, t1, w2, t2, w3, t3, w4, b4)
      - w* are bf16, [in_pad, out_pad], with BN scale folded into the columns
        of layers 1-3 and zero-padding so every hidden/out dim is a 128 multiple
      - t*/b* are f32 per-feature shifts (BN beta - mean*scale + bias*scale), padded
    """
    dims_real = [(input_size, hidden_size), (hidden_size, 128), (128, 64), (64, OUTPUT_SIZE)]
    H1 = _round_up(hidden_size, 128)
    dims_pad = [(input_size, H1), (H1, 128), (128, 128), (128, OUT_PAD)]

    keys = jax.random.split(key, 16)
    ki = iter(keys)

    params = []
    for li, ((d_in, d_out), (p_in, p_out)) in enumerate(zip(dims_real, dims_pad)):
        w = jax.random.normal(next(ki), (d_in, d_out), jnp.float32) * (1.0 / jnp.sqrt(d_in))
        b = jax.random.normal(next(ki), (1, d_out), jnp.float32) * 0.01
        if li < 3:  # Linear -> BatchNorm1d -> activation
            gamma = 1.0 + 0.1 * jax.random.normal(next(ki), (1, d_out), jnp.float32)
            beta = 0.1 * jax.random.normal(next(ki), (1, d_out), jnp.float32)
            run_mean = 0.05 * jnp.arange(d_out, dtype=jnp.float32).reshape(1, d_out) / d_out
            run_var = jnp.ones((1, d_out), jnp.float32) * 1.5
            eps = 1e-5
            scale = gamma / jnp.sqrt(run_var + eps)
            shift = beta - run_mean * scale + b * scale     # fold linear bias into BN shift
            w_fold = w * scale                              # fold BN scale into weight cols (f32)
            w_p = jnp.zeros((p_in, p_out), jnp.float32).at[:d_in, :d_out].set(w_fold)
            t_p = jnp.zeros((1, p_out), jnp.float32).at[:, :d_out].set(shift)
            params.extend([w_p.astype(jnp.bfloat16), t_p])
        else:  # final Linear(64, 3), lane-dense padded to OUT_PAD
            w_p = jnp.zeros((p_in, p_out), jnp.float32).at[:d_in, :d_out].set(w)
            b_p = jnp.zeros((1, p_out), jnp.float32).at[:, :d_out].set(b)
            params.extend([w_p.astype(jnp.bfloat16), b_p])
    return tuple(params)


def mlp_reference(x, params):
    """Pure-JAX reference of the same fused graph (same bf16/f32 mixed precision)."""
    (w1, t1, w2, t2, w3, t3, w4, b4) = params
    h = jnp.dot(x.astype(jnp.bfloat16), w1, preferred_element_type=jnp.float32) + t1
    h = jnp.maximum(h, 0.0)
    h = jnp.dot(h.astype(jnp.bfloat16), w2, preferred_element_type=jnp.float32) + t2
    h = jnp.where(h > 0.0, h, 0.01 * h)
    h = jnp.dot(h.astype(jnp.bfloat16), w3, preferred_element_type=jnp.float32) + t3
    h = jnp.maximum(h, 0.0)
    out = jnp.dot(h.astype(jnp.bfloat16), w4, preferred_element_type=jnp.float32) + b4
    return out[:, :OUTPUT_SIZE]


if __name__ == "__main__":
    key = jax.random.PRNGKey(0)
    k_x, k_p = jax.random.split(key)

    batch, input_size, hidden_size = 8, 32, 64
    x = jax.random.normal(k_x, (batch, input_size), jnp.float32)
    params = init_params(k_p, input_size, hidden_size)

    fwd = jax.jit(mlp_forward)
    out = fwd(x, params)
    out = jax.block_until_ready(out)

    ref = mlp_reference(x, params)
    assert out.shape == (batch, OUTPUT_SIZE)
    assert jnp.allclose(out, ref, atol=2e-2, rtol=2e-2), (
        f"max abs diff: {jnp.max(jnp.abs(out - ref))}")
    print("KERNEL_OK")
</pallas_src>

<mosaic_0001>
module attributes {stable_mosaic.version = 11 : i64} {
  func.func @mlp_kernel(%arg0: i32, %arg1: memref<8x32xf32, #tpu.memory_space<vmem>>, %arg2: memref<32x128xbf16, #tpu.memory_space<vmem>>, %arg3: memref<1x128xf32, #tpu.memory_space<vmem>>, %arg4: memref<128x128xbf16, #tpu.memory_space<vmem>>, %arg5: memref<1x128xf32, #tpu.memory_space<vmem>>, %arg6: memref<128x128xbf16, #tpu.memory_space<vmem>>, %arg7: memref<1x128xf32, #tpu.memory_space<vmem>>, %arg8: memref<128x128xbf16, #tpu.memory_space<vmem>>, %arg9: memref<1x128xf32, #tpu.memory_space<vmem>>, %arg10: memref<8x128xbf16, #tpu.memory_space<vmem>>) attributes {dimension_semantics = [#tpu.dimension_semantics<parallel>], iteration_bounds = array<i64: 2>, scalar_prefetch = 0 : i64, scratch_operands = 0 : i64, tpu.core_type = #tpu.core_type<tc>, window_params = [{transform_indices = @transform_0, window_bounds = array<i64: 8, 32>}, {pipeline_mode = #tpu.pipeline_mode<synchronous>, transform_indices = @transform_1, window_bounds = array<i64: 32, 128>}, {pipeline_mode = #tpu.pipeline_mode<synchronous>, transform_indices = @transform_2, window_bounds = array<i64: 1, 128>}, {pipeline_mode = #tpu.pipeline_mode<synchronous>, transform_indices = @transform_3, window_bounds = array<i64: 128, 128>}, {pipeline_mode = #tpu.pipeline_mode<synchronous>, transform_indices = @transform_4, window_bounds = array<i64: 1, 128>}, {pipeline_mode = #tpu.pipeline_mode<synchronous>, transform_indices = @transform_5, window_bounds = array<i64: 128, 128>}, {pipeline_mode = #tpu.pipeline_mode<synchronous>, transform_indices = @transform_6, window_bounds = array<i64: 1, 128>}, {pipeline_mode = #tpu.pipeline_mode<synchronous>, transform_indices = @transform_7, window_bounds = array<i64: 128, 128>}, {pipeline_mode = #tpu.pipeline_mode<synchronous>, transform_indices = @transform_8, window_bounds = array<i64: 1, 128>}, {transform_indices = @transform_9, window_bounds = array<i64: 8, 128>}]} {
    %c0 = arith.constant 0 : index
    %c0_0 = arith.constant 0 : index
    %0 = vector.load %arg1[%c0, %c0_0] : memref<8x32xf32, #tpu.memory_space<vmem>>, vector<8x32xf32>
    %1 = arith.truncf %0 : vector<8x32xf32> to vector<8x32xbf16>
    %c0_1 = arith.constant 0 : index
    %c0_2 = arith.constant 0 : index
    %2 = vector.load %arg2[%c0_1, %c0_2] : memref<32x128xbf16, #tpu.memory_space<vmem>>, vector<32x128xbf16>
    %cst = arith.constant dense<0.000000e+00> : vector<8x128xf32>
    %3 = tpu.matmul %1, %2, %cst {dimension_numbers = #tpu.dot_dimension_numbers<[1], [0], [0], [1], [0, 0, 1, 1], [], []>} : vector<8x32xbf16>, vector<32x128xbf16>, vector<8x128xf32> -> vector<8x128xf32>
    %c0_3 = arith.constant 0 : index
    %c0_4 = arith.constant 0 : index
    %4 = vector.load %arg3[%c0_3, %c0_4] : memref<1x128xf32, #tpu.memory_space<vmem>>, vector<1x128xf32>
    %5 = vector.broadcast %4 : vector<1x128xf32> to vector<8x128xf32>
    %6 = arith.addf %3, %5 : vector<8x128xf32>
    %cst_5 = arith.constant 0.000000e+00 : f32
    %7 = vector.broadcast %cst_5 : f32 to vector<8x128xf32>
    %8 = arith.maximumf %6, %7 : vector<8x128xf32>
    %9 = arith.truncf %8 : vector<8x128xf32> to vector<8x128xbf16>
    %c0_6 = arith.constant 0 : index
    %c0_7 = arith.constant 0 : index
    %10 = vector.load %arg4[%c0_6, %c0_7] : memref<128x128xbf16, #tpu.memory_space<vmem>>, vector<128x128xbf16>
    %cst_8 = arith.constant dense<0.000000e+00> : vector<8x128xf32>
    %11 = tpu.matmul %9, %10, %cst_8 {dimension_numbers = #tpu.dot_dimension_numbers<[1], [0], [0], [1], [0, 0, 1, 1], [], []>} : vector<8x128xbf16>, vector<128x128xbf16>, vector<8x128xf32> -> vector<8x128xf32>
    %c0_9 = arith.constant 0 : index
    %c0_10 = arith.constant 0 : index
    %12 = vector.load %arg5[%c0_9, %c0_10] : memref<1x128xf32, #tpu.memory_space<vmem>>, vector<1x128xf32>
    %13 = vector.broadcast %12 : vector<1x128xf32> to vector<8x128xf32>
    %14 = arith.addf %11, %13 : vector<8x128xf32>
    %cst_11 = arith.constant 0.000000e+00 : f32
    %15 = vector.broadcast %cst_11 : f32 to vector<8x128xf32>
    %16 = arith.cmpf ogt, %14, %15 : vector<8x128xf32>
    %cst_12 = arith.constant 0.00999999977 : f32
    %17 = vector.broadcast %cst_12 : f32 to vector<8x128xf32>
    %18 = arith.mulf %17, %14 : vector<8x128xf32>
    %19 = arith.select %16, %14, %18 : vector<8x128xi1>, vector<8x128xf32>
    %20 = arith.truncf %19 : vector<8x128xf32> to vector<8x128xbf16>
    %c0_13 = arith.constant 0 : index
    %c0_14 = arith.constant 0 : index
    %21 = vector.load %arg6[%c0_13, %c0_14] : memref<128x128xbf16, #tpu.memory_space<vmem>>, vector<128x128xbf16>
    %cst_15 = arith.constant dense<0.000000e+00> : vector<8x128xf32>
    %22 = tpu.matmul %20, %21, %cst_15 {dimension_numbers = #tpu.dot_dimension_numbers<[1], [0], [0], [1], [0, 0, 1, 1], [], []>} : vector<8x128xbf16>, vector<128x128xbf16>, vector<8x128xf32> -> vector<8x128xf32>
    %c0_16 = arith.constant 0 : index
    %c0_17 = arith.constant 0 : index
    %23 = vector.load %arg7[%c0_16, %c0_17] : memref<1x128xf32, #tpu.memory_space<vmem>>, vector<1x128xf32>
    %24 = vector.broadcast %23 : vector<1x128xf32> to vector<8x128xf32>
    %25 = arith.addf %22, %24 : vector<8x128xf32>
    %cst_18 = arith.constant 0.000000e+00 : f32
    %26 = vector.broadcast %cst_18 : f32 to vector<8x128xf32>
    %27 = arith.maximumf %25, %26 : vector<8x128xf32>
    %28 = arith.truncf %27 : vector<8x128xf32> to vector<8x128xbf16>
    %c0_19 = arith.constant 0 : index
    %c0_20 = arith.constant 0 : index
    %29 = vector.load %arg8[%c0_19, %c0_20] : memref<128x128xbf16, #tpu.memory_space<vmem>>, vector<128x128xbf16>
    %cst_21 = arith.constant dense<0.000000e+00> : vector<8x128xf32>
    %30 = tpu.matmul %28, %29, %cst_21 {dimension_numbers = #tpu.dot_dimension_numbers<[1], [0], [0], [1], [0, 0, 1, 1], [], []>} : vector<8x128xbf16>, vector<128x128xbf16>, vector<8x128xf32> -> vector<8x128xf32>
    %c0_22 = arith.constant 0 : index
    %c0_23 = arith.constant 0 : index
    %31 = vector.load %arg9[%c0_22, %c0_23] : memref<1x128xf32, #tpu.memory_space<vmem>>, vector<1x128xf32>
    %32 = vector.broadcast %31 : vector<1x128xf32> to vector<8x128xf32>
    %33 = arith.addf %30, %32 : vector<8x128xf32>
    %34 = arith.truncf %33 : vector<8x128xf32> to vector<8x128xbf16>
    %c0_24 = arith.constant 0 : index
    %c0_25 = arith.constant 0 : index
    %35 = vector.load %arg10[%c0_24, %c0_25] : memref<8x128xbf16, #tpu.memory_space<vmem>>, vector<8x128xbf16>
    tpu.vector_store %arg10[%c0_24, %c0_25], %34 {strides = array<i32>} : memref<8x128xbf16, #tpu.memory_space<vmem>>, vector<8x128xbf16>,
    return
  }
  func.func @transform_0(%arg0: i32) -> (i32, i32) {
    %c0_i32 = arith.constant 0 : i32
    %c0_i32_0 = arith.constant 0 : i32
    return %arg0, %c0_i32 : i32, i32
  }
  func.func @transform_1(%arg0: i32) -> (i32, i32) {
    %c0_i32 = arith.constant 0 : i32
    %c0_i32_0 = arith.constant 0 : i32
    %c0_i32_1 = arith.constant 0 : i32
    return %c0_i32, %c0_i32_0 : i32, i32
  }
  func.func @transform_2(%arg0: i32) -> (i32, i32) {
    %c0_i32 = arith.constant 0 : i32
    %c0_i32_0 = arith.constant 0 : i32
    %c0_i32_1 = arith.constant 0 : i32
    return %c0_i32, %c0_i32_0 : i32, i32
  }
  func.func @transform_3(%arg0: i32) -> (i32, i32) {
    %c0_i32 = arith.constant 0 : i32
    %c0_i32_0 = arith.constant 0 : i32
    %c0_i32_1 = arith.constant 0 : i32
    return %c0_i32, %c0_i32_0 : i32, i32
  }
  func.func @transform_4(%arg0: i32) -> (i32, i32) {
    %c0_i32 = arith.constant 0 : i32
    %c0_i32_0 = arith.constant 0 : i32
    %c0_i32_1 = arith.constant 0 : i32
    return %c0_i32, %c0_i32_0 : i32, i32
  }
  func.func @transform_5(%arg0: i32) -> (i32, i32) {
    %c0_i32 = arith.constant 0 : i32
    %c0_i32_0 = arith.constant 0 : i32
    %c0_i32_1 = arith.constant 0 : i32
    return %c0_i32, %c0_i32_0 : i32, i32
  }
  func.func @transform_6(%arg0: i32) -> (i32, i32) {
    %c0_i32 = arith.constant 0 : i32
    %c0_i32_0 = arith.constant 0 : i32
    %c0_i32_1 = arith.constant 0 : i32
    return %c0_i32, %c0_i32_0 : i32, i32
  }
  func.func @transform_7(%arg0: i32) -> (i32, i32) {
    %c0_i32 = arith.constant 0 : i32
    %c0_i32_0 = arith.constant 0 : i32
    %c0_i32_1 = arith.constant 0 : i32
    return %c0_i32, %c0_i32_0 : i32, i32
  }
  func.func @transform_8(%arg0: i32) -> (i32, i32) {
    %c0_i32 = arith.constant 0 : i32
    %c0_i32_0 = arith.constant 0 : i32
    %c0_i32_1 = arith.constant 0 : i32
    return %c0_i32, %c0_i32_0 : i32, i32
  }
  func.func @transform_9(%arg0: i32) -> (i32, i32) {
    %c0_i32 = arith.constant 0 : i32
    %c0_i32_0 = arith.constant 0 : i32
    return %arg0, %c0_i32 : i32, i32
  }
}

</mosaic_0001>

<bundles_post_ra>
// kernel: mlp_forward.1
= control target key start
LH: loop header
LB: loop body
LE: loop exit
PB: predicated region body
PF: predicated region fallthrough
CT: control target
= control target key end

     0   :  { %14 = vsyncpa [#allocation3], 0  ;;  %s1178_s0 = inlined_call_operand.vmem [shape: f32[16,32], index: 0, kind: input, shape index: {}]   ;;  %s1179_s1 = inlined_call_operand.vmem [shape: bf16[32,128], index: 1, kind: input, shape index: {}]   ;;  %s1180_s2 = inlined_call_operand.vmem [shape: f32[1,128], index: 2, kind: input, shape index: {}]   ;;  %s1181_s3 = inlined_call_operand.hbm [shape: bf16[128,128], index: 3, kind: input, shape index: {}]   ;;  %s1182_s4 = inlined_call_operand.vmem [shape: f32[1,128], index: 4, kind: input, shape index: {}]   ;;  %s1183_s5 = inlined_call_operand.hbm [shape: bf16[128,128], index: 5, kind: input, shape index: {}]   ;;  %s1184_s6 = inlined_call_operand.vmem [shape: f32[1,128], index: 6, kind: input, shape index: {}]   ;;  %s1185_s7 = inlined_call_operand.hbm [shape: bf16[128,128], index: 7, kind: input, shape index: {}]   ;;  %s1186_s8 = inlined_call_operand.vmem [shape: f32[1,128], index: 8, kind: input, shape index: {}]   ;;  %s1187_s9 = inlined_call_operand.vmem [shape: bf16[16,128], index: 9, kind: output, shape index: {}]  }
   0x1   :  { %15 = vsyncpa [#allocation5], 0  ;;  %s1107_s30 = smov 0  }
   0x2 LB: > { %s1113_s10 = sadd.s32 4294967295, %s1050_s30   ;;  %p757_p0 = scmp.ge.s32.totalorder %s1050_s30, 1  ;;  %s1050_s30 = sphi %s1107_s30, %s21_s30  }
   0x3   : > { %p246_p1 = scmp.lt.s32.totalorder %s1050_s30, 3  ;;  %p923_p2 = scmp.eq.s32.totalorder %s1113_s10, 0 }
   0x4   : > { %s280_s13 = sshll.u32 %s1183_s5, 4  ;;  %s263_s17 = sshll.u32 %s1181_s3, 4  ;;  %s281_s13 = int_to_ptr.hbm [resolvable:$true] %s280_s13  ;;  %s264_s17 = int_to_ptr.hbm [resolvable:$true] %s263_s17 }
   0x5   : > { %p1121_p3 = pnand %p757_p0, %p246_p1  ;;  %s1052_s18 = smov [#allocation4]  }
   0x6   : > { %s282_s19 = sshll.u32 %s1052_s18, 4  ;;  %s1053_s20 = smov [#allocation2]   ;;  %s283_s19 = int_to_ptr.vmem [resolvable:$true] %s282_s19 }
   0x7   : > { %p913_p4 = pneg %p1121_p3  ;;  %s265_s21 = sshll.u32 %s1053_s20, 4  ;;  %s266_s21 = int_to_ptr.vmem [resolvable:$true] %s265_s21 }
   0x8   : > { %s297_s24 = sshll.u32 %s1185_s7, 4  ;;  %s1054_s25 = smov 64   ;;  %s298_s24 = int_to_ptr.hbm [resolvable:$true] %s297_s24 }
   0x9   : > { %p914_p5 = pnand %p923_p2, %p913_p4  ;;  %s1055_s26 = smov 4  }
   0xa   : > { %s1056_s27 = smov [#allocation6]   ;;  %325 = sbr.rel (%p1121_p3) target bundleno = 569 (0x239), region = 56 }
   0xb   : > { %919 = dma.hbm_to_vmem [thread:$0]  (!%p914_p5), %s281_s13, 1024, %s283_s19, [#allocation5], %s1054_s25, %s1054_s25, %s1055_s26  }
   0xc   : > { %916 = dma.hbm_to_vmem [thread:$0]  (!%p914_p5), %s264_s17, 1024, %s266_s21, [#allocation3], %s1054_s25, %s1054_s25, %s1055_s26  }
   0xd   : > { %s299_s28 = sshll.u32 %s1056_s27, 4  ;;  %s300_s28 = int_to_ptr.vmem [resolvable:$true] %s299_s28 }
   0xe   : > { %922 = dma.hbm_to_vmem [thread:$0]  (!%p914_p5), %s298_s24, 1024, %s300_s28, [#allocation5], %s1054_s25, %s1054_s25, %s1055_s26  }
   0xf   : > { %1041 = dma.done.wait (%p923_p2), [#allocation3], 1024  }
  0x10   : > { %1043 = vsyncadd (%p923_p2), [#allocation3], 4294966272 }
  0x11   : > { %1045 = dma.done.wait (%p923_p2), [#allocation5], 2048  }
  0x12   : > { %1047 = vsyncadd (%p923_p2), [#allocation5], 4294965248  ;;  %p370_p6 = scmp.lt.s32.totalorder %s1113_s10, 1  ;;  %v876_v0 = vld [vmem:[%s1179_s1 + $0x8] sm:$0xff]  ;;  %v884_v1 = vld [vmem:[#allocation2 + $0x38] sm:$0xff]  ;;  %vm401_vm0 = vcmask 261120  }
  0x13   : > { %411 = vmatpush.bf16.msra.mxu0 %v876_v0  ;;  %v875_v2 = vld [vmem:[%s1179_s1] sm:$0xff]  ;;  %488 = vmatpush.bf16.msra.mxu1 %v884_v1  ;;  %v883_v4 = vld [vmem:[#allocation2 + $0x30] sm:$0xff]  ;;  %v882_v6 = vld [vmem:[#allocation2 + $0x28] sm:$0xff] }
  0x14   : > { %s1190_s10 = smov (!%p370_p6, %s1113_s10), 1  ;;  %v881_v7 = vld [vmem:[#allocation2 + $0x20] sm:$0xff]  ;;  %v880_v8 = vld [vmem:[#allocation2 + $0x18] sm:$0xff]  ;;  %v879_v9 = vld [vmem:[#allocation2 + $0x10] sm:$0xff] }
  0x15   : > { %s766_s29 = sshll.u32 %s1190_s10, 3  ;;  %v878_v10 = vld [vmem:[#allocation2 + $0x8] sm:$0xff]  ;;  %v877_v11 = vld [vmem:[#allocation2] sm:$0xff]  ;;  %v892_v12 = vld [vmem:[#allocation4 + $0x38] sm:$0xff]  ;;  %s767_s26 = sshll.u32 %s1190_s10, 2 }
  0x16   : > { %s373_s13 = scalar_lea.vmem %s1178_s0, %s766_s29  ;;  %573 = vmatpush.bf16.msra.mxu2 %v892_v12  ;;  %v891_v13 = vld [vmem:[#allocation4 + $0x30] sm:$0xff]  ;;  %v890_v14 = vld [vmem:[#allocation4 + $0x28] sm:$0xff]  ;;  %v889_v15 = vld [vmem:[#allocation4 + $0x20] sm:$0xff]  ;;  %s377_s29 = scalar_lea.vmem %s1187_s9, %s767_s26 }
  0x17   : > { %v379_v3 = vld [vmem:[%s373_s13] sm:$0xff]  ;;  %412 = vmatpush.bf16.msra.mxu0 %v875_v2  ;;  %489 = vmatpush.bf16.msra.mxu1 %v883_v4  ;;  %v888_v16 = vld [vmem:[#allocation4 + $0x18] sm:$0xff]  ;;  %v887_v17 = vld [vmem:[#allocation4 + $0x10] sm:$0xff] }
  0x18   : > { %v380_v5 = vpack.c.bf16 %v379_v3, %v379_v3  ;;  %v942_v18 = vld [vmem:[%s1180_s2] ss:$0 sm:$0xff]  ;;  %v886_v24 = vld [vmem:[#allocation4 + $0x8] sm:$0xff]  ;;  %v900_v26 = vld [vmem:[#allocation6 + $0x38] sm:$0xff] }
  0x19   : > { %v885_v25 = vld [vmem:[#allocation4] sm:$0xff]  ;;  %656 = vmatpush.bf16.msra.mxu3 %v900_v26  ;;  %v899_v27 = vld [vmem:[#allocation6 + $0x30] sm:$0xff]  ;;  %v898_v28 = vld [vmem:[#allocation6 + $0x28] sm:$0xff] }
  0x1a   : > { %776 = vmatmul.msk.bf16.vlgmr.msra.gmra.mxu0 %vm401_vm0, %v380_v5  ;;  %574 = vmatpush.bf16.msra.mxu2 %v891_v13  ;;  %v897_v29 = vld [vmem:[#allocation6 + $0x20] sm:$0xff]  ;;  %v896_v30 = vld [vmem:[#allocation6 + $0x18] sm:$0xff]  ;;  %v895_v31 = vld [vmem:[#allocation6 + $0x10] sm:$0xff] }
  0x1b   : > { %490 = vmatpush.bf16.msra.mxu1 %v882_v6  ;;  %v943_v32 = vld [vmem:[%s1182_s4] ss:$0 sm:$0xff]  ;;  %v894_v39 = vld [vmem:[#allocation6 + $0x8] sm:$0xff] }
  0x1c   : > { %v893_v40 = vld [vmem:[#allocation6] sm:$0xff] }
  0x1d   : > { %657 = vmatpush.bf16.msra.mxu3 %v899_v27  ;;  %v944_v41 = vld [vmem:[%s1184_s6] ss:$0 sm:$0xff] }
  0x1e   : > { %575 = vmatpush.bf16.msra.mxu2 %v890_v14  ;;  %v945_v47 = vld [vmem:[%s1186_s8] ss:$0 sm:$0xff] }
  0x1f   : > { %491 = vmatpush.bf16.msra.mxu1 %v881_v7 }
  0x21   : > { %658 = vmatpush.bf16.msra.mxu3 %v898_v28 }
  0x22   : > { %576 = vmatpush.bf16.msra.mxu2 %v889_v15 }
  0x23   : > { %492 = vmatpush.bf16.msra.mxu1 %v880_v8 }
  0x25   : > { %659 = vmatpush.bf16.msra.mxu3 %v897_v29 }
  0x26   : > { %577 = vmatpush.bf16.msra.mxu2 %v888_v16 }
  0x27   : > { %493 = vmatpush.bf16.msra.mxu1 %v879_v9 }
  0x29   : > { %660 = vmatpush.bf16.msra.mxu3 %v896_v30 }
  0x2a   : > { %578 = vmatpush.bf16.msra.mxu2 %v887_v17 }
  0x2b   : > { %494 = vmatpush.bf16.msra.mxu1 %v878_v10 }
  0x2d   : > { %661 = vmatpush.bf16.msra.mxu3 %v895_v31 }
  0x2e   : > { %579 = vmatpush.bf16.msra.mxu2 %v886_v24 }
  0x2f   : > { %495 = vmatpush.bf16.msra.mxu1 %v877_v11 }
  0x31   : > { %662 = vmatpush.bf16.msra.mxu3 %v894_v39 }
  0x32   : > { %580 = vmatpush.bf16.msra.mxu2 %v885_v25 }
  0x35   : > { %663 = vmatpush.bf16.msra.mxu3 %v893_v40 }
  0x97   : > { %v414_v19 = vpop.f32.mrf.mxu0 }
  0x98   : > { %v415_v20 = vadd.f32 %v942_v18, %v414_v19 }
  0x9a   : > { %v418_v21 = vmax.f32 %v415_v20, 0.0 }
  0x9c   : > { %v419_v22 = vpack.c.bf16 %v418_v21, %v418_v21 }
  0x9e   : > { %496 = vmatmul.bf16.vlgmr.msra.gmra.mxu1 %v419_v22 }
  0x9f   : > { %v416_v23 = vpop.f32.mrf.mxu0 }
 0x11b   : > { %v497_v33 = vpop.f32.mrf.mxu1 }
 0x11c   : > { %v498_v34 = vadd.f32 %v943_v32, %v497_v33 }
 0x11e   : > { %v502_v35 = vmul.f32 0.01, %v498_v34  ;;  %vm501_vm1 = vcmp.gt.f32.partialorder %v498_v34, 0.0 }
 0x120   : > { %v503_v36 = vsel %vm501_vm1, %v498_v34, %v502_v35 }
 0x121   : > { %v504_v37 = vpack.c.bf16 %v503_v36, %v503_v36 }
 0x123   : > { %v499_v38 = vpop.f32.mrf.mxu1  ;;  %581 = vmatmul.bf16.vlgmr.msra.gmra.mxu2 %v504_v37 }
 0x1a6   : > { %v582_v42 = vpop.f32.mrf.mxu2 }
 0x1a7   : > { %v583_v43 = vadd.f32 %v944_v41, %v582_v42 }
 0x1a9   : > { %v586_v44 = vmax.f32 %v583_v43, 0.0 }
 0x1ab   : > { %v587_v45 = vpack.c.bf16 %v586_v44, %v586_v44 }
 0x1ad   : > { %664 = vmatmul.bf16.vlgmr.msra.gmra.mxu3 %v587_v45 }
 0x1ae   : > { %v584_v46 = vpop.f32.mrf.mxu2 }
 0x230   : > { %v665_v48 = vpop.f32.mrf.mxu3 }
 0x231   : > { %v666_v49 = vadd.f32 %v945_v47, %v665_v48 }
 0x233   : > { %v669_v50 = vpack.c.bf16 %v666_v49, %v666_v49 }
 0x235   : > { %670 = vst [vmem:[%s377_s29] sm:$0xf] %v669_v50 }
 0x238   : > { %v667_v51 = vpop.f32.mrf.mxu3 }
 0x239 PF: > { %s21_s30 = sadd.s32 1, %s1050_s30  }
 0x23a   : > { %p18_p7 = scmp.ge.s32.totalorder %s21_s30, 4  }
 0x23c   :  { %20 = sbr.rel (!%p18_p7) target bundleno = 2 (0x2), region = 99 }
 0x241   :  { %690 = vsyncpa [#allocation3], 1 }
 0x242   :  { %692 = vsyncpa [#allocation3 + $0x1], 1 }
 0x243   :  { %693 = vsyncpa [#allocation5], 1 }

</bundles_post_ra>
